<compile_context>
chip_gen: v6e
topology: v6e:2x2x1
jax: 0.10.0
libtpu: 0.0.40
codegen_flags: <defaults>
</compile_context>

<pallas_src>
import jax
import jax.numpy as jnp
from jax.experimental import pallas as pl
from jax.experimental.pallas import tpu as pltpu


def stsgcl_kernel(x_ref, temb_ref, semb_ref, acat_ref, w_ref, b_ref, o_ref):
    # x_ref:    [1, C, T, V]        (one batch element)
    # temb_ref: [1, C, T, 1]
    # semb_ref: [1, C, 1, V]
    # acat_ref: [V, 3V]             pre-sliced/reordered adjacency (middle V columns)
    # w_ref:    [G*C, C]            all GCN branch weights stacked
    # b_ref:    [G*C, 1]            all GCN branch biases stacked
    # o_ref:    [1, C, (T-2)*V]     lane-dense flattened output
    C = x_ref.shape[1]
    T = x_ref.shape[2]
    V = x_ref.shape[3]
    G = w_ref.shape[0] // C
    Tm2 = T - 2

    # 1) Embedding add, once over the whole [C, T, V] block (broadcasts stay cheap).
    xe = x_ref[0] + temb_ref[0] + semb_ref[0]                     # [C, T, V]

    # 2) Vertex aggregation for every time step in a single MXU matmul.
    #    Y[:, k*V:(k+1)*V] = xe_flat @ A_k   with A_k = adj[k*V:(k+1)*V, V:2V]
    x2 = xe.reshape(C * T, V)                                     # [C*T, V]
    y = jnp.dot(x2, acat_ref[...], preferred_element_type=jnp.float32)  # [C*T, 3V]
    y3 = y.reshape(C, T, 3 * V)

    # z_t = x_t@A0 + x_{t+1}@A1 + x_{t+2}@A2  == (x_t|x_{t+1}|x_{t+2}) @ adj[:, V:2V]
    z = (y3[:, 0:Tm2, 0:V]
         + y3[:, 1:T - 1, V:2 * V]
         + y3[:, 2:T, 2 * V:3 * V])                               # [C, T-2, V]
    z2 = z.reshape(C, Tm2 * V)                                    # [C, (T-2)*V]

    # 3) All GCN branches fused into one matmul, bias + ReLU on the fused block.
    h = jnp.dot(w_ref[...], z2, preferred_element_type=jnp.float32)  # [G*C, (T-2)*V]
    h = jnp.maximum(h + b_ref[...], 0.0)

    # 4) Max over the G branches (sublane-aligned row-block slices), one dense store.
    out = h[0:C, :]
    for g in range(1, G):
        out = jnp.maximum(out, h[g * C:(g + 1) * C, :])
    o_ref[0] = out.astype(o_ref.dtype)


def stsgcl_forward(x, temporal_emb, spatial_emb, adj, W, bias):
    B, C, T, V = x.shape
    G = W.shape[0]
    Tm2 = T - 2

    # Only the middle V columns of the 3V-wide result survive the final slice and
    # bias/ReLU/max are column-wise, so pre-slice adj to its middle column block and
    # lay it out as the [V, 3V] block-row matrix consumed by the kernel:
    #   A_k = adj[k*V:(k+1)*V, V:2V],   acat = [A_0 | A_1 | A_2]
    acat = jnp.concatenate(
        [adj[0:V, V:2 * V], adj[V:2 * V, V:2 * V], adj[2 * V:3 * V, V:2 * V]],
        axis=1)                                                   # [V, 3V]
    w_flat = W.reshape(G * C, C)                                  # [G*C, C]
    b_flat = bias.reshape(G * C, 1)                               # [G*C, 1]

    # NOTE: at production shapes, consider pipeline_mode=pl.Buffered(1) for the
    # grid-invariant operands (emb/adj/W/b) and an explicit vmem_limit_bytes for
    # v7x's smaller 64 MiB VMEM; irrelevant at these toy sizes.
    out_flat = pl.pallas_call(
        stsgcl_kernel,
        out_shape=jax.ShapeDtypeStruct((B, C, Tm2 * V), x.dtype),
        grid_spec=pltpu.PrefetchScalarGridSpec(
            num_scalar_prefetch=0,
            grid=(B,),
            in_specs=[
                pl.BlockSpec((1, C, T, V), lambda b: (b, 0, 0, 0)),
                pl.BlockSpec((1, C, T, 1), lambda b: (0, 0, 0, 0)),
                pl.BlockSpec((1, C, 1, V), lambda b: (0, 0, 0, 0)),
                pl.BlockSpec((V, 3 * V), lambda b: (0, 0)),
                pl.BlockSpec((G * C, C), lambda b: (0, 0)),
                pl.BlockSpec((G * C, 1), lambda b: (0, 0)),
            ],
            out_specs=pl.BlockSpec((1, C, Tm2 * V), lambda b: (b, 0, 0)),
        ),
        compiler_params=pltpu.CompilerParams(
            dimension_semantics=("parallel",)),
    )(x, temporal_emb, spatial_emb, acat, w_flat, b_flat)

    return out_flat.reshape(B, C, Tm2, V)


def stsgcl_reference(x, temporal_emb, spatial_emb, adj, W, bias):
    """Pure-JAX reference reproducing the PyTorch forward (full 3V width + slice)."""
    xe = x + temporal_emb + spatial_emb
    x_cat = jnp.concatenate(
        [xe[:, :, :-2, :], xe[:, :, 1:-1, :], xe[:, :, 2:, :]], axis=-1)  # [B,C,T-2,3V]
    z = jnp.einsum('bctu,uv->bctv', x_cat, adj)
    outs = []
    for g in range(W.shape[0]):
        h = jnp.einsum('oc,bctv->botv', W[g], z) + bias[g][None, :, None, None]
        outs.append(jax.nn.relu(h))
    out = jnp.max(jnp.stack(outs, axis=0), axis=0)
    V = out.shape[-1] // 3
    return out[..., V:-V]


if __name__ == "__main__":
    # Small shapes consistent with the module: args.n_channel=8, args.n_his=8,
    # args.n_vertex=16, args.gcn_num=2, layer=0, batch=2.
    B, C, T, V, G = 2, 8, 8, 16, 2

    key = jax.random.PRNGKey(0)
    k_x, k_te, k_se, k_adj, k_w, k_b = jax.random.split(key, 6)

    x = jax.random.normal(k_x, (B, C, T, V), dtype=jnp.float32)
    temporal_emb = jax.random.uniform(k_te, (1, C, T, 1), dtype=jnp.float32)  # torch.rand
    spatial_emb = jax.random.uniform(k_se, (1, C, 1, V), dtype=jnp.float32)   # torch.rand
    adj = jax.random.uniform(k_adj, (3 * V, 3 * V), dtype=jnp.float32) / (3 * V)
    W = jax.random.normal(k_w, (G, C, C), dtype=jnp.float32) * 0.1
    bias = jax.random.normal(k_b, (G, C), dtype=jnp.float32) * 0.1

    out = stsgcl_forward(x, temporal_emb, spatial_emb, adj, W, bias)
    out = jax.block_until_ready(out)

    ref = stsgcl_reference(x, temporal_emb, spatial_emb, adj, W, bias)
    assert out.shape == (B, C, T - 2, V), out.shape
    assert jnp.allclose(out, ref, rtol=1e-5, atol=1e-5), float(jnp.max(jnp.abs(out - ref)))

    print("KERNEL_OK")
</pallas_src>

<mosaic_0001>
module attributes {stable_mosaic.version = 11 : i64} {
  func.func @stsgcl_kernel(%arg0: i32, %arg1: memref<1x8x8x16xf32, #tpu.memory_space<vmem>>, %arg2: memref<1x8x8x1xf32, #tpu.memory_space<vmem>>, %arg3: memref<1x8x1x16xf32, #tpu.memory_space<vmem>>, %arg4: memref<16x48xf32, #tpu.memory_space<vmem>>, %arg5: memref<16x8xf32, #tpu.memory_space<vmem>>, %arg6: memref<16x1xf32, #tpu.memory_space<vmem>>, %arg7: memref<1x8x96xf32, #tpu.memory_space<vmem>>) attributes {dimension_semantics = [#tpu.dimension_semantics<parallel>], iteration_bounds = array<i64: 2>, scalar_prefetch = 0 : i64, scratch_operands = 0 : i64, tpu.core_type = #tpu.core_type<tc>, window_params = [{transform_indices = @transform_0, window_bounds = array<i64: 1, 8, 8, 16>}, {pipeline_mode = #tpu.pipeline_mode<synchronous>, transform_indices = @transform_1, window_bounds = array<i64: 1, 8, 8, 1>}, {pipeline_mode = #tpu.pipeline_mode<synchronous>, transform_indices = @transform_2, window_bounds = array<i64: 1, 8, 1, 16>}, {pipeline_mode = #tpu.pipeline_mode<synchronous>, transform_indices = @transform_3, window_bounds = array<i64: 16, 48>}, {pipeline_mode = #tpu.pipeline_mode<synchronous>, transform_indices = @transform_4, window_bounds = array<i64: 16, 8>}, {pipeline_mode = #tpu.pipeline_mode<synchronous>, transform_indices = @transform_5, window_bounds = array<i64: 16, 1>}, {transform_indices = @transform_6, window_bounds = array<i64: 1, 8, 96>}]} {
    %c0 = arith.constant 0 : index
    %c0_0 = arith.constant 0 : index
    %c0_1 = arith.constant 0 : index
    %c0_2 = arith.constant 0 : index
    %0 = vector.load %arg1[%c0, %c0_0, %c0_1, %c0_2] : memref<1x8x8x16xf32, #tpu.memory_space<vmem>>, vector<1x8x8x16xf32>
    %1 = vector.shape_cast %0 : vector<1x8x8x16xf32> to vector<8x8x16xf32>
    %c0_3 = arith.constant 0 : index
    %c0_4 = arith.constant 0 : index
    %c0_5 = arith.constant 0 : index
    %c0_6 = arith.constant 0 : index
    %2 = vector.load %arg2[%c0_3, %c0_4, %c0_5, %c0_6] : memref<1x8x8x1xf32, #tpu.memory_space<vmem>>, vector<1x8x8x1xf32>
    %3 = vector.shape_cast %2 : vector<1x8x8x1xf32> to vector<8x8x1xf32>
    %4 = vector.broadcast %3 : vector<8x8x1xf32> to vector<8x8x16xf32>
    %5 = arith.addf %1, %4 : vector<8x8x16xf32>
    %c0_7 = arith.constant 0 : index
    %c0_8 = arith.constant 0 : index
    %c0_9 = arith.constant 0 : index
    %c0_10 = arith.constant 0 : index
    %6 = vector.load %arg3[%c0_7, %c0_8, %c0_9, %c0_10] : memref<1x8x1x16xf32, #tpu.memory_space<vmem>>, vector<1x8x1x16xf32>
    %7 = vector.shape_cast %6 : vector<1x8x1x16xf32> to vector<8x1x16xf32>
    %8 = vector.broadcast %7 : vector<8x1x16xf32> to vector<8x8x16xf32>
    %9 = arith.addf %5, %8 : vector<8x8x16xf32>
    %10 = vector.shape_cast %9 : vector<8x8x16xf32> to vector<64x16xf32>
    %c0_11 = arith.constant 0 : index
    %c0_12 = arith.constant 0 : index
    %11 = vector.load %arg4[%c0_11, %c0_12] : memref<16x48xf32, #tpu.memory_space<vmem>>, vector<16x48xf32>
    %cst = arith.constant dense<0.000000e+00> : vector<64x48xf32>
    %12 = tpu.matmul %10, %11, %cst {dimension_numbers = #tpu.dot_dimension_numbers<[1], [0], [0], [1], [0, 0, 1, 1], [], []>} : vector<64x16xf32>, vector<16x48xf32>, vector<64x48xf32> -> vector<64x48xf32>
    %13 = vector.shape_cast %12 : vector<64x48xf32> to vector<8x8x48xf32>
    %14 = vector.extract_strided_slice %13 {offsets = [0, 0, 0], sizes = [8, 6, 16], strides = [1, 1, 1]} : vector<8x8x48xf32> to vector<8x6x16xf32>
    %15 = vector.extract_strided_slice %13 {offsets = [0, 1, 16], sizes = [8, 6, 16], strides = [1, 1, 1]} : vector<8x8x48xf32> to vector<8x6x16xf32>
    %16 = arith.addf %14, %15 : vector<8x6x16xf32>
    %17 = vector.extract_strided_slice %13 {offsets = [0, 2, 32], sizes = [8, 6, 16], strides = [1, 1, 1]} : vector<8x8x48xf32> to vector<8x6x16xf32>
    %18 = arith.addf %16, %17 : vector<8x6x16xf32>
    %19 = vector.shape_cast %18 : vector<8x6x16xf32> to vector<8x96xf32>
    %c0_13 = arith.constant 0 : index
    %c0_14 = arith.constant 0 : index
    %20 = vector.load %arg5[%c0_13, %c0_14] : memref<16x8xf32, #tpu.memory_space<vmem>>, vector<16x8xf32>
    %cst_15 = arith.constant dense<0.000000e+00> : vector<16x96xf32>
    %21 = tpu.matmul %20, %19, %cst_15 {dimension_numbers = #tpu.dot_dimension_numbers<[1], [0], [0], [1], [0, 0, 1, 1], [], []>} : vector<16x8xf32>, vector<8x96xf32>, vector<16x96xf32> -> vector<16x96xf32>
    %c0_16 = arith.constant 0 : index
    %c0_17 = arith.constant 0 : index
    %22 = vector.load %arg6[%c0_16, %c0_17] : memref<16x1xf32, #tpu.memory_space<vmem>>, vector<16x1xf32>
    %23 = vector.broadcast %22 : vector<16x1xf32> to vector<16x96xf32>
    %24 = arith.addf %21, %23 : vector<16x96xf32>
    %cst_18 = arith.constant 0.000000e+00 : f32
    %25 = vector.broadcast %cst_18 : f32 to vector<16x96xf32>
    %26 = arith.maximumf %24, %25 : vector<16x96xf32>
    %27 = vector.extract_strided_slice %26 {offsets = [0, 0], sizes = [8, 96], strides = [1, 1]} : vector<16x96xf32> to vector<8x96xf32>
    %28 = vector.extract_strided_slice %26 {offsets = [8, 0], sizes = [8, 96], strides = [1, 1]} : vector<16x96xf32> to vector<8x96xf32>
    %29 = arith.maximumf %27, %28 : vector<8x96xf32>
    %c0_19 = arith.constant 0 : index
    %c0_20 = arith.constant 0 : index
    %c0_21 = arith.constant 0 : index
    %30 = vector.load %arg7[%c0_19, %c0_20, %c0_21] : memref<1x8x96xf32, #tpu.memory_space<vmem>>, vector<1x8x96xf32>
    %31 = vector.shape_cast %30 : vector<1x8x96xf32> to vector<8x96xf32>
    %32 = vector.shape_cast %29 : vector<8x96xf32> to vector<1x8x96xf32>
    tpu.vector_store %arg7[%c0_19, %c0_20, %c0_21], %32 {strides = array<i32>} : memref<1x8x96xf32, #tpu.memory_space<vmem>>, vector<1x8x96xf32>,
    return
  }
  func.func @transform_0(%arg0: i32) -> (i32, i32, i32, i32) {
    %c0_i32 = arith.constant 0 : i32
    %c0_i32_0 = arith.constant 0 : i32
    %c0_i32_1 = arith.constant 0 : i32
    %c0_i32_2 = arith.constant 0 : i32
    return %arg0, %c0_i32, %c0_i32_0, %c0_i32_1 : i32, i32, i32, i32
  }
  func.func @transform_1(%arg0: i32) -> (i32, i32, i32, i32) {
    %c0_i32 = arith.constant 0 : i32
    %c0_i32_0 = arith.constant 0 : i32
    %c0_i32_1 = arith.constant 0 : i32
    %c0_i32_2 = arith.constant 0 : i32
    %c0_i32_3 = arith.constant 0 : i32
    return %c0_i32, %c0_i32_0, %c0_i32_1, %c0_i32_2 : i32, i32, i32, i32
  }
  func.func @transform_2(%arg0: i32) -> (i32, i32, i32, i32) {
    %c0_i32 = arith.constant 0 : i32
    %c0_i32_0 = arith.constant 0 : i32
    %c0_i32_1 = arith.constant 0 : i32
    %c0_i32_2 = arith.constant 0 : i32
    %c0_i32_3 = arith.constant 0 : i32
    return %c0_i32, %c0_i32_0, %c0_i32_1, %c0_i32_2 : i32, i32, i32, i32
  }
  func.func @transform_3(%arg0: i32) -> (i32, i32) {
    %c0_i32 = arith.constant 0 : i32
    %c0_i32_0 = arith.constant 0 : i32
    %c0_i32_1 = arith.constant 0 : i32
    return %c0_i32, %c0_i32_0 : i32, i32
  }
  func.func @transform_4(%arg0: i32) -> (i32, i32) {
    %c0_i32 = arith.constant 0 : i32
    %c0_i32_0 = arith.constant 0 : i32
    %c0_i32_1 = arith.constant 0 : i32
    return %c0_i32, %c0_i32_0 : i32, i32
  }
  func.func @transform_5(%arg0: i32) -> (i32, i32) {
    %c0_i32 = arith.constant 0 : i32
    %c0_i32_0 = arith.constant 0 : i32
    %c0_i32_1 = arith.constant 0 : i32
    return %c0_i32, %c0_i32_0 : i32, i32
  }
  func.func @transform_6(%arg0: i32) -> (i32, i32, i32) {
    %c0_i32 = arith.constant 0 : i32
    %c0_i32_0 = arith.constant 0 : i32
    %c0_i32_1 = arith.constant 0 : i32
    return %arg0, %c0_i32, %c0_i32_0 : i32, i32, i32
  }
}

</mosaic_0001>

<bundles_post_ra>
// kernel: tpu_custom_call.1
= control target key start
LH: loop header
LB: loop body
LE: loop exit
PB: predicated region body
PF: predicated region fallthrough
CT: control target
= control target key end

     0   :  { %11 = vsyncpa [#allocation3], 0  ;;  %s1461_s0 = inlined_call_operand.hbm [shape: f32[2,8,8,16], index: 0, kind: input, shape index: {}]   ;;  %s1462_s1 = inlined_call_operand.vmem [shape: f32[1,8,8,1], index: 1, kind: input, shape index: {}]   ;;  %s1463_s2 = inlined_call_operand.vmem [shape: f32[1,8,1,16], index: 2, kind: input, shape index: {}]   ;;  %s1464_s3 = inlined_call_operand.vmem [shape: f32[16,48], index: 3, kind: input, shape index: {}]   ;;  %s1465_s4 = inlined_call_operand.vmem [shape: f32[16,8], index: 4, kind: input, shape index: {}]   ;;  %s1466_s5 = inlined_call_operand.vmem [shape: f32[16,1], index: 5, kind: input, shape index: {}]   ;;  %s1467_s6 = inlined_call_operand.hbm [shape: f32[2,8,96], index: 6, kind: output, shape index: {}]  }
   0x1   :  { %13 = vsyncpa [#allocation3 + $0x1], 0 }
   0x2   :  { %14 = vsyncpa [#allocation4], 0 }
   0x3   :  { %16 = vsyncpa [#allocation4 + $0x1], 0  ;;  %s1223_s21 = smov 0   ;;  %s1225_s22 = smov 0  }
   0x4   :  { %s1227_s23 = smov 0   ;;  %s1229_s24 = smov 0  }
   0x5 LB: > { %s1244_s25 = sadd.s32 4294967295, %s1172_s24   ;;  %s950_s26 = sadd.s32 4294967294, %s1172_s24   ;;  %s1172_s24 = sphi %s1229_s24, %s1482_s24   ;;  %s1168_s23 = sphi %s1227_s23, %s1481_s23   ;;  %s1164_s22 = sphi %s1225_s22, %s1480_s22   ;;  %s1160_s21 = sphi %s1223_s21, %s1479_s21  }
   0x6   : > { %s1248_s27 = sadd.s32 1, %s1172_s24   ;;  %s29_s28 = sadd.s32 1, %s1168_s23 }
   0x7   : > { %s26_s29 = ssub.s32 %s1172_s24, %s1248_s27  ;;  %p36_p0 = scmp.ne.s32.totalorder %s1168_s23, %s1164_s22 }
   0x8   : > { %p27_p1 = scmp.eq.s32.totalorder %s26_s29, 0  ;;  %p37_p2 = scmp.eq.s32.totalorder %s1172_s24, 0 }
   0x9   : > { %p42_p3 = scmp.ne.s32.totalorder %s1164_s22, %s1160_s21  ;;  %p43_p4 = scmp.eq.s32.totalorder %s1244_s25, 0 }
   0xa   : > { %s1260_s30 = scalar_select %p27_p1, %s1168_s23, %s29_s28  }
   0xb   : > { %p1262_p5 = por %p37_p2, %p36_p0  ;;  %p1266_p6 = por %p43_p4, %p42_p3 }
   0xc   : > { %p171_p7 = scmp.eq.s32.totalorder %s1244_s25, 1  ;;  %p177_p8 = scmp.eq.s32.totalorder %s950_s26, 1 }
   0xd   : > { %s1471_s8 = scalar_select %p1266_p6, 1, 0 }
   0xe   : > { %p1032_p10 = scmp.lt.s32.totalorder %s1172_s24, 2  ;;  %p1273_p11 = por %p171_p7, %p36_p0 }
   0xf   : > { %p1277_p12 = por %p177_p8, %p42_p3  ;;  %s212_s11 = sand.u32 1, %s1168_s23  }
  0x10   : > { %s1472_s9 = scalar_select %p1273_p11, 1, 0 }
  0x11   : > { %s1473_s10 = scalar_select %p1277_p12, 1, 0 }
  0x12   : > { %s981_s12 = sshll.u32 %s1172_s24, 10  ;;  %s953_s13 = sshll.u32 %s212_s11, 6 }
  0x13   : > { %s1286_s16 = scalar_lea.hbm %s1461_s0, %s981_s12  ;;  %s216_s17 = scalar_lea.vmem [#allocation2], %s953_s13 }
  0x14   : > { %s223_s18 = sshll.u32 %s216_s17, 4  ;;  %p1290_p13 = pnand %p1032_p10, %p1262_p5  ;;  %s1294_s18 = int_to_ptr.vmem [resolvable:$true] %s223_s18 }
  0x15   : > { %s1296_s20 = scalar_lea.sflag [#allocation3], %s212_s11  ;;  %s1080_s26 = scalar_lea.hbm %s1286_s16, 1024 }
  0x16   : > { %p1081_p0 = scmp.ne.s32.totalorder %s1286_s16, %s1080_s26  ;;  %p1082_p1 = pneg %p1290_p13 }
  0x17   : > { %s1085_s12 = scalar_lea.hbm %s1461_s0, 2048  ;;  %p1086_p4 = scmp.lt.s32.totalorder %s1286_s16, %s1461_s0 }
  0x18   : > { %p1083_p2 = pnand %p1082_p1, %p1081_p0  ;;  %p1087_p5 = scmp.lt.s32.totalorder %s1085_s12, %s1080_s26 }
  0x1a   : > { %p1084_p3 = pneg %p1083_p2  ;;  %p1088_p7 = por %p1087_p5, %p1086_p4 }
  0x1c   : > { %p1089_p8 = pnand %p1088_p7, %p1084_p3 }
  0x1e   : > { %1092 = shalt.err (!%p1089_p8)
}
  0x1f   : > { %s1093_s11 = scalar_lea.vmem %s1294_s18, 1024  ;;  %s1174_s14 = smov [#allocation2]  }
  0x20   : > { %p1094_p10 = scmp.ne.s32.totalorder %s1294_s18, %s1093_s11  ;;  %s1098_s15 = sshll.u32 %s1174_s14, 4  ;;  %s1099_s15 = int_to_ptr.vmem [resolvable:$false] %s1098_s15 }
  0x21   : > { %s1100_s17 = scalar_lea.vmem %s1099_s15, 2048  ;;  %p1101_p2 = scmp.lt.s32.totalorder %s1294_s18, %s1099_s15 }
  0x22   : > { %p1096_p9 = pnand %p1094_p10, %p1082_p1  ;;  %p1102_p12 = scmp.lt.s32.totalorder %s1100_s17, %s1093_s11 }
  0x24   : > { %p1097_p0 = pneg %p1096_p9  ;;  %p1103_p11 = por %p1102_p12, %p1101_p2 }
  0x26   : > { %p1104_p6 = pnand %p1103_p11, %p1097_p0 }
  0x28   : > { %1107 = shalt.err (!%p1104_p6)
}
  0x29   : > { %s1175_s26 = smov 128   ;;  %s1176_s28 = smov 8  }
  0x2a   : > { %1027 = dma.hbm_to_vmem [thread:$0]  (!%p1290_p13), %s1286_s16, 1024, %s1294_s18, %s1296_s20, %s1175_s26, %s1175_s26, %s1176_s28  }
  0x2b   : > { %p956_p9 = scmp.ge.s32.totalorder %s1172_s24, 1  ;;  %p231_p1 = scmp.lt.s32.totalorder %s1172_s24, 3 }
  0x2d   : > { %p232_p3 = pnand %p956_p9, %p231_p1 }
  0x2e   : > { %s1320_s29 = sand.u32 (!%p232_p3), 1, %s1164_s22   ;;  %p1475_p6 = scmp.ne.s32.totalorder (!%p232_p3), %s1471_s8, 0 }
  0x2f   : > { %235 = sbr.rel (%p232_p3) target bundleno = 883 (0x373), region = 44  ;;  %s957_s12 = sshll.u32 (!%p232_p3), %s1320_s29, 6 }
  0x30   : > { %s238_s7 = scalar_lea.sflag (!%p232_p3), [#allocation3], %s1320_s29  ;;  %s1324_s13 = scalar_lea.vmem (!%p232_p3), [#allocation2], %s957_s12 }
  0x34   : > { %1151 = dma.done.wait (%p1475_p6), %s238_s7, 1024  }
  0x35   : > { %1153 = vsyncadd (%p1475_p6), %s238_s7, 4294966272  ;;  %v1177_v0 = vmov 0   ;;  %v280_v1 = vld [vmem:[%s1462_s1 + $0x10] sm:$0xff]  ;;  %v278_v2 = vld [vmem:[%s1462_s1] sm:$0xff]  ;;  %vm400_vm0 = vcmask 130048   ;;  %s1179_s28 = smov 96  }
  0x36   : > { %1079 = vset.pattern.permute.xlu1 %v1177_v0  ;;  %1078 = vset.pattern.permute.xlu0 %v1177_v0  ;;  %v281_v3 = vld [vmem:[%s1462_s1 + $0x18] sm:$0xff]  ;;  %v279_v4 = vld [vmem:[%s1462_s1 + $0x8] sm:$0xff]  ;;  %v398_v6 = vld [vmem:[%s1464_s3] sm:$0xff]  ;;  %vm779_vm1 = vcmask 64512   ;;  %s1182_s16 = smov 32   ;;  %s1183_s18 = smov 16  }
  0x37   : > { %298 = vperm.xlu1 %1079, %v280_v1   ;;  %288 = vperm.xlu0 %1078, %v278_v2   ;;  %v399_v5 = vld [vmem:[%s1464_s3 + $0x8] sm:$0xff]  ;;  %v284_v7 = vld [vmem:[%s1462_s1 + $0x30] sm:$0xff]  ;;  %v282_v8 = vld [vmem:[%s1462_s1 + $0x20] sm:$0xff]  ;;  %s1184_s19 = smov 64   ;;  %s1185_s20 = smov 48   ;;  %vm757_vm2 = vcmask 261120  }
  0x38   : > { %995 = vmatprep.subr.mxu0 %v399_v5  ;;  %1016 = vmatprep.subr.mxu1 %v399_v5  ;;  %v285_v9 = vld [vmem:[%s1462_s1 + $0x38] sm:$0xff]  ;;  %v283_v10 = vld [vmem:[%s1462_s1 + $0x28] sm:$0xff]  ;;  %v270_v11 = vld [vmem:[%s1324_s13] sm:$0xff]  ;;  %s1186_s15 = smov 80   ;;  %vm759_vm3 = vcmask 392192   ;;  %vm761_vm4 = vcmask 523264  }
  0x39   : > { %996 = vmatpush3.msra.mxu0 %v399_v5  ;;  %1018 = vmatpush3.msra.mxu1 %v399_v5  ;;  %v959_v14 = vld [vmem:[%s1463_s2] ss:$0 sm:$0xff]  ;;  %v272_v15 = vld [vmem:[%s1324_s13 + $0x10] sm:$0xff]  ;;  %v271_v17 = vld [vmem:[%s1324_s13 + $0x8] sm:$0xff]  ;;  %vm763_vm5 = vcmask 654336   ;;  %s978_s12 = sshll.u32 %s1244_s25, 7 }
  0x3a   : > { %997 = vmatprep.subr.mxu0 %v398_v6  ;;  %1017 = vmatprep.subr.mxu1 %v398_v6  ;;  %v273_v21 = vld [vmem:[%s1324_s13 + $0x18] sm:$0xff]  ;;  %v960_v22 = vld [vmem:[%s1463_s2 + $0x1] ss:$0 sm:$0xff]  ;;  %v961_v24 = vld [vmem:[%s1463_s2 + $0x2] ss:$0 sm:$0xff]  ;;  %vm864_vm6 = vcmask 785408  }
  0x3b   : > { %303 = vperm.xlu1 %1079, %v281_v3   ;;  %293 = vperm.xlu0 %1078, %v279_v4   ;;  %v276_v26 = vld [vmem:[%s1324_s13 + $0x30] sm:$0xff]  ;;  %v274_v27 = vld [vmem:[%s1324_s13 + $0x20] sm:$0xff]  ;;  %v277_v38 = vld [vmem:[%s1324_s13 + $0x38] sm:$0xff]  ;;  %s867_s11 = scalar_lea.sflag [#allocation4], %s1320_s29  ;;  %p1476_p12 = scmp.ne.s32.totalorder %s1472_s9, 0 }
  0x3c   : > { %998 = vmatpush3.msra.mxu0 %v398_v6  ;;  %1019 = vmatpush3.msra.mxu1 %v398_v6  ;;  %v962_v31 = vld [vmem:[%s1463_s2 + $0x3] ss:$0 sm:$0xff]  ;;  %v963_v33 = vld [vmem:[%s1463_s2 + $0x4] ss:$0 sm:$0xff]  ;;  %v965_v35 = vld [vmem:[%s1463_s2 + $0x6] ss:$0 sm:$0xff] }
  0x3d   : > { %v275_v39 = vld [vmem:[%s1324_s13 + $0x28] sm:$0xff]  ;;  %v966_v43 = vld [vmem:[%s1463_s2 + $0x7] ss:$0 sm:$0xff]  ;;  %v964_v45 = vld [vmem:[%s1463_s2 + $0x5] ss:$0 sm:$0xff]  ;;  %s1178_s13 = smov 112  }
  0x3f   : > { %318 = vperm.xlu1 %1079, %v284_v7   ;;  %308 = vperm.xlu0 %1078, %v282_v8  }
  0x43   : > { %323 = vperm.xlu1 %1079, %v285_v9   ;;  %313 = vperm.xlu0 %1078, %v283_v10  }
  0xb2   : > { %v299_v12 = vpop.permute.xlu1 %298  ;;  %v289_v13 = vpop.permute.xlu0 %288 }
  0xb3   : > { %v326_v16 = vadd.f32 %v289_v13, %v270_v11  ;;  %v328_v19 = vadd.f32 %v299_v12, %v272_v15 }
  0xb5   : > { %v390_v18 = vadd.f32 %v959_v14, %v326_v16  ;;  %v392_v30 = vadd.f32 %v961_v24, %v328_v19  ;;  %v623_v24 = vlaneseq }
  0xb6   : > { %v304_v20 = vpop.permute.xlu1 %303  ;;  %v294_v23 = vpop.permute.xlu0 %293 }
  0xb7   : > { %v327_v25 = vadd.f32 %v294_v23, %v271_v17  ;;  %999 = vmatprep.mubr.msk.f32.mxu0 %vm400_vm0, %v390_v18  ;;  %v329_v28 = vadd.f32 %v304_v20, %v273_v21  ;;  %v1180_v21 = vmov 1983009808  }
  0xb9   : > { %v391_v29 = vadd.f32 %v960_v22, %v327_v25  ;;  %v393_v40 = vadd.f32 %v962_v31, %v329_v28  ;;  %v621_v22 = vunpack.c.l.s4 %v1180_v21 }
  0xba   : > { %v319_v32 = vpop.permute.xlu1 %318  ;;  %v309_v34 = vpop.permute.xlu0 %308 }
  0xbb   : > { %v332_v36 = vadd.f32 %v319_v32, %v276_v26  ;;  %v330_v37 = vadd.f32 %v309_v34, %v274_v27  ;;  %1000 = vmatmul.mubr.msk.f32.vlgmr.msra.gmra.mxu0 %vm400_vm0, %v391_v29 }
  0xbc   : > { %1002 = vmatprep.mubr.msk.f32.mxu0 %vm400_vm0, %v392_v30  ;;  %v622_v30 = vunpack.c.0.s8 %v621_v22 }
  0xbd   : > { %v394_v41 = vadd.f32 %v963_v33, %v330_v37  ;;  %v396_v42 = vadd.f32 %v965_v35, %v332_v36  ;;  %v624_v33 = vshrl.u32 %v623_v24, 7 }
  0xbe   : > { %v324_v44 = vpop.permute.xlu1 %323  ;;  %v314_v46 = vpop.permute.xlu0 %313 }
  0xbf   : > { %v333_v47 = vadd.f32 %v324_v44, %v277_v38  ;;  %v331_v48 = vadd.f32 %v314_v46, %v275_v39  ;;  %1003 = vmatmul.mubr.msk.f32.gmra.mxu0 %vm400_vm0, %v393_v40  ;;  %1008 = vmatprep.mubr.msk.f32.mxu1 %vm400_vm0, %v396_v42  ;;  %v1181_v39 = vmov 1934713408  }
  0xc0   : > { %1005 = vmatprep.mubr.msk.f32.mxu0 %vm400_vm0, %v394_v41  ;;  %v685_v40 = vunpack.c.l.s4 %v1181_v39 }
  0xc1   : > { %v397_v49 = vadd.f32 %v966_v43, %v333_v47  ;;  %v395_v50 = vadd.f32 %v964_v45, %v331_v48  ;;  %v625_v43 = vsub.s32 %v622_v30, %v624_v33 }
  0xc3   : > { %1006 = vmatmul.mubr.msk.f32.gmra.mxu0 %vm400_vm0, %v395_v50  ;;  %1009 = vmatmul.mubr.msk.f32.vlgmr.msra.gmra.mxu1 %vm400_vm0, %v397_v49 }
 0x17b   : > { %v1001_v51 = vpop.f32.mrf.mxu0 }
 0x17c   : > { %v539_v52 = vrot.slane %v1001_v51, 1  ;;  %v579_v60 = vrot.slane %v1001_v51, 2 }
 0x17d   : > { %v491_v53 = vpop.f32.mrf.mxu0 }
 0x17e   : > { %v538_v54 = vrot.slane %v491_v53, 1  ;;  %548 = vrot.lane.b32.xlu1 %v539_v52, %s1178_s13  ;;  %v578_v61 = vrot.slane %v491_v53, 2 }
 0x17f   : > { %v1004_v59 = vpop.f32.mrf.mxu0 }
 0x180   : > { %546 = vrot.lane.b32.xlu0 %v538_v54, %s1178_s13  ;;  %v541_v63 = vrot.slane %v1004_v59, 1  ;;  %v581_v2 = vrot.slane %v1004_v59, 2 }
 0x181   : > { %v501_v62 = vpop.f32.mrf.mxu0 }
 0x182   : > { %v540_v0 = vrot.slane %v501_v62, 1  ;;  %v580_v3 = vrot.slane %v501_v62, 2 }
 0x183   : > { %v1400_v55 = vpop.f32.mrf.mxu1  ;;  %v1007_v1 = vpop.f32.mrf.mxu0 }
 0x184   : > { %v545_v56 = vrot.slane %v1400_v55, 1  ;;  %v543_v5 = vrot.slane %v1007_v1, 1  ;;  %v583_v7 = vrot.slane %v1007_v1, 2  ;;  %v585_v9 = vrot.slane %v1400_v55, 2 }
 0x185   : > { %v1403_v57 = vpop.f32.mrf.mxu1  ;;  %v511_v4 = vpop.f32.mrf.mxu0 }
 0x186   : > { %v544_v58 = vrot.slane %v1403_v57, 1  ;;  %560 = vrot.lane.b32.xlu1 %v545_v56, %s1178_s13  ;;  %v542_v6 = vrot.slane %v511_v4, 1  ;;  %v582_v8 = vrot.slane %v511_v4, 2  ;;  %v584_v10 = vrot.slane %v1403_v57, 2 }
 0x188   : > { %558 = vrot.lane.b32.xlu0 %v544_v58, %s1178_s13 }
 0x18a   : > { %588 = vrot.lane.b32.xlu1 %v579_v60, %s1179_s28 }
 0x18c   : > { %586 = vrot.lane.b32.xlu0 %v578_v61, %s1179_s28 }
 0x18e   : > { %552 = vrot.lane.b32.xlu1 %v541_v63, %s1178_s13 }
 0x190   : > { %550 = vrot.lane.b32.xlu0 %v540_v0, %s1178_s13 }
 0x192   : > { %592 = vrot.lane.b32.xlu1 %v581_v2, %s1179_s28 }
 0x194   : > { %590 = vrot.lane.b32.xlu0 %v580_v3, %s1179_s28 }
 0x196   : > { %556 = vrot.lane.b32.xlu1 %v543_v5, %s1178_s13 }
 0x198   : > { %554 = vrot.lane.b32.xlu0 %v542_v6, %s1178_s13 }
 0x19a   : > { %596 = vrot.lane.b32.xlu1 %v583_v7, %s1179_s28 }
 0x19c   : > { %594 = vrot.lane.b32.xlu0 %v582_v8, %s1179_s28 }
 0x19e   : > { %600 = vrot.lane.b32.xlu1 %v585_v9, %s1179_s28 }
 0x1a0   : > { %598 = vrot.lane.b32.xlu0 %v584_v10, %s1179_s28  ;;  %s958_s28 = sshll.u32 %s1320_s29, 3 }
 0x1a1   : > { %s269_s7 = scalar_lea.vmem [#allocation5], %s958_s28 }
 0x1f0   : > { %v549_v11 = vpop.permute.xlu1 %548 }
 0x1f1   : > { %v571_v31 = vadd.f32 %v1001_v51, %v549_v11 }
 0x1f2   : > { %v547_v12 = vpop.permute.xlu0 %546 }
 0x1f3   : > { %v570_v26 = vadd.f32 %v547_v12, %v491_v53  ;;  %v686_v53 = vunpack.c.0.s8 %v685_v40 }
 0x1f5   : > { %v689_v2 = vsub.s32 %v686_v53, %v624_v33 }
 0x1f8   : > { %v561_v13 = vpop.permute.xlu1 %560 }
 0x1f9   : > { %v577_v41 = vadd.f32 %v1400_v55, %v561_v13 }
 0x1fa   : > { %v559_v14 = vpop.permute.xlu0 %558 }
 0x1fb   : > { %v576_v46 = vadd.f32 %v559_v14, %v1403_v57 }
 0x1fc   : > { %v589_v15 = vpop.permute.xlu1 %588 }
 0x1fd   : > { %v611_v36 = vadd.f32 %v589_v15, %v571_v31  ;;  %v765_v15 = vld [vmem:[%s1465_s4] sm:$0xff] }
 0x1fe   : > { %v587_v16 = vpop.permute.xlu0 %586  ;;  %1013 = vmatprep.mubr.msk.f32.mxu1 %vm779_vm1, %v765_v15 }
 0x1ff   : > { %v610_v32 = vadd.f32 %v587_v16, %v570_v26 }
 0x200   : > { %v553_v17 = vpop.permute.xlu1 %552 }
 0x201   : > { %v573_v27 = vadd.f32 %v1004_v59, %v553_v17 }
 0x202   : > { %v551_v18 = vpop.permute.xlu0 %550 }
 0x203   : > { %v572_v23 = vadd.f32 %v551_v18, %v501_v62 }
 0x204   : > { %v593_v19 = vpop.permute.xlu1 %592 }
 0x205   : > { %v613_v34 = vadd.f32 %v593_v19, %v573_v27 }
 0x206   : > { %v591_v20 = vpop.permute.xlu0 %590 }
 0x207   : > { %v612_v28 = vadd.f32 %v591_v20, %v572_v23  ;;  %v634_v44 = vcombine.low %v611_v36, %v613_v34  ;;  %v635_v60 = vcombine.high %v611_v36, %v613_v34  ;;  %v767_v23 = vld [vmem:[%s1466_s5] sm:$0xff]  ;;  %v766_v36 = vld [vmem:[%s1465_s4 + $0x8] sm:$0xff] }
 0x208   : > { %v557_v25 = vpop.permute.xlu1 %556 }
 0x209   : > { %v618_v37 = vcombine.low %v610_v32, %v612_v28  ;;  %v575_v42 = vadd.f32 %v1007_v1, %v557_v25  ;;  %v619_v50 = vcombine.high %v610_v32, %v612_v28  ;;  %v642_v61 = vrot.slane %v634_v44, %v625_v43  ;;  %v768_v25 = vld [vmem:[%s1466_s5 + $0x8] sm:$0xff] }
 0x20a   : > { %v555_v29 = vpop.permute.xlu0 %554  ;;  %v649_v6 = vrot.slane %v635_v60, %v625_v43 }
 0x20b   : > { %v574_v47 = vadd.f32 %v555_v29, %v511_v4  ;;  %v626_v51 = vrot.slane %v618_v37, %v625_v43  ;;  %v633_v63 = vrot.slane %v619_v50, %v625_v43 }
 0x20c   : > { %v597_v35 = vpop.permute.xlu1 %596 }
 0x20d   : > { %v615_v48 = vadd.f32 %v597_v35, %v575_v42  ;;  %v682_v0 = vcombine.low %v626_v51, %v642_v61  ;;  %v683_v1 = vcombine.high %v626_v51, %v642_v61  ;;  %v698_v10 = vcombine.low %v633_v63, %v649_v6 }
 0x20e   : > { %v595_v38 = vpop.permute.xlu0 %594 }
 0x20f   : > { %v614_v54 = vadd.f32 %v595_v38, %v574_v47  ;;  %v697_v11 = vrot.slane %v683_v1, %v689_v2  ;;  %v690_v13 = vrot.slane %v682_v0, %v689_v2  ;;  %v705_v20 = vrot.slane %v698_v10, %v689_v2 }
 0x210   : > { %v601_v45 = vpop.permute.xlu1 %600 }
 0x211   : > { %v617_v49 = vadd.f32 %v601_v45, %v577_v41 }
 0x212   : > { %v599_v52 = vpop.permute.xlu0 %598 }
 0x213   : > { %v666_v56 = vcombine.low %v615_v48, %v617_v49  ;;  %v667_v58 = vcombine.high %v615_v48, %v617_v49  ;;  %v616_v59 = vadd.f32 %v599_v52, %v576_v46 }
 0x215   : > { %v650_v55 = vcombine.low %v614_v54, %v616_v59  ;;  %v651_v62 = vcombine.high %v614_v54, %v616_v59  ;;  %v674_v57 = vrot.slane %v666_v56, %v625_v43  ;;  %v681_v3 = vrot.slane %v667_v58, %v625_v43 }
 0x217   : > { %v658_v4 = vrot.slane %v650_v55, %v625_v43  ;;  %v665_v5 = vrot.slane %v651_v62, %v625_v43 }
 0x219   : > { %v706_v7 = vcombine.low %v658_v4, %v674_v57  ;;  %v707_v8 = vcombine.high %v658_v4, %v674_v57  ;;  %v722_v9 = vcombine.low %v665_v5, %v681_v3 }
 0x21b   : > { %v721_v12 = vrot.slane %v707_v8, %v689_v2  ;;  %v714_v14 = vrot.slane %v706_v7, %v689_v2  ;;  %v729_v18 = vrot.slane %v722_v9, %v689_v2 }
 0x21d   : > { %v732_v16 = vcombine.low %v697_v11, %v721_v12  ;;  %v731_v17 = vcombine.high %v690_v13, %v714_v14  ;;  %v730_v19 = vcombine.low %v690_v13, %v714_v14  ;;  %v734_v21 = vcombine.low %v705_v20, %v729_v18 }
 0x21e   : > { %v733_v22 = vcombine.high %v697_v11, %v721_v12  ;;  %v735_v24 = vcombine.high %v705_v20, %v729_v18 }
 0x21f   : > { %741 = vrot.lane.b32.xlu1 %v732_v16, %s1182_s16  ;;  %737 = vrot.lane.b32.xlu0 %v731_v17, %s1183_s18  ;;  %s880_s16 = sshll.u32 %s269_s7, 4  ;;  %s881_s16 = int_to_ptr.vmem [resolvable:$true] %s880_s16 }
 0x220   : > { %s1108_s14 = scalar_lea.vmem %s881_s16, 128 }
 0x221   : > { %p1109_p11 = scmp.ne.s32.totalorder %s881_s16, %s1108_s14 }
 0x223   : > { %749 = vrot.lane.b32.xlu1 %v734_v21, %s1184_s19  ;;  %745 = vrot.lane.b32.xlu0 %v733_v22, %s1185_s20  ;;  %s878_s20 = scalar_lea.hbm %s1467_s6, %s978_s12  ;;  %p1110_p13 = pnand %p1109_p11, %p1476_p12 }
 0x225   : > { %p1111_p4 = pneg %p1110_p13 }
 0x227   : > { %771 = vperm.xlu1 %1079, %v767_v23   ;;  %753 = vrot.lane.b32.xlu0 %v735_v24, %s1186_s15  ;;  %s1187_s15 = smov [#allocation5]  }
 0x228   : > { %s1112_s25 = sshll.u32 %s1187_s15, 4  ;;  %s1113_s25 = int_to_ptr.vmem [resolvable:$false] %s1112_s25 }
 0x229   : > { %s1114_s8 = scalar_lea.vmem %s1113_s25, 256  ;;  %p1115_p5 = scmp.lt.s32.totalorder %s881_s16, %s1113_s25 }
 0x22a   : > { %p1116_p7 = scmp.lt.s32.totalorder %s1114_s8, %s1108_s14 }
 0x22b   : > { %776 = vperm.xlu0 %1078, %v768_v25  }
 0x22c   : > { %p1117_p8 = por %p1116_p7, %p1115_p5 }
 0x22e   : > { %p1118_p10 = pnand %p1117_p8, %p1111_p4 }
 0x291   : > { %v742_v26 = vpop.permute.xlu1 %741  ;;  %v738_v27 = vpop.permute.xlu0 %737 }
 0x292   : > { %v756_v28 = vsel %vm400_vm0, %v730_v19, %v738_v27 }
 0x293   : > { %v758_v30 = vsel %vm757_vm2, %v756_v28, %v742_v26 }
 0x295   : > { %v746_v29 = vpop.permute.xlu0 %745  ;;  %v750_v31 = vpop.permute.xlu1 %749 }
 0x296   : > { %v760_v32 = vsel %vm759_vm3, %v758_v30, %v746_v29 }
 0x297   : > { %v762_v34 = vsel %vm761_vm4, %v760_v32, %v750_v31 }
 0x299   : > { %v754_v33 = vpop.permute.xlu0 %753 }
 0x29a   : > { %v764_v35 = vsel %vm763_vm5, %v762_v34, %v754_v33 }
 0x29b   : > { %1011 = vmatprep.subr.mxu1 %v764_v35 }
 0x29c   : > { %1012 = vmatpush3.msra.mxu1 %v764_v35 }
 0x29d   : > { %1014 = vmatmul.mubr.msk.f32.vlgmr.msra.gmra.mxu1 %vm779_vm1, %v766_v36 }
 0x2a2   : > { %v772_v40 = vpop.permute.xlu1 %771 }
 0x2a6   : > { %v777_v37 = vpop.permute.xlu0 %776 }
 0x35d   : > { %v1015_v38 = vpop.f32.mrf.mxu1 }
 0x35e   : > { %v858_v39 = vadd.f32 %v1015_v38, %v777_v37 }
 0x35f   : > { %v852_v41 = vpop.f32.mrf.mxu1 }
 0x360   : > { %v853_v42 = vadd.f32 %v852_v41, %v772_v40  ;;  %v862_v43 = vmax.f32 %v858_v39, 0.0 }
 0x362   : > { %v861_v44 = vmax.f32 %v853_v42, 0.0 }
 0x364   : > { %v863_v45 = vmax.f32 %v861_v44, %v862_v43 }
 0x366   : > { %865 = vst.msk [vmem:[%s269_s7] sm:$0xff] %vm864_vm6, %v863_v45 }
 0x367   : > { %1121 = shalt.err (!%p1118_p10)
}
 0x368   : > { %s1122_s17 = scalar_lea.hbm %s878_s20, 128  ;;  %s1126_s13 = scalar_lea.hbm %s1467_s6, 256 }
 0x369   : > { %p1123_p0 = scmp.ne.s32.totalorder %s878_s20, %s1122_s17  ;;  %p1127_p1 = scmp.lt.s32.totalorder %s878_s20, %s1467_s6 }
 0x36a   : > { %p1128_p3 = scmp.lt.s32.totalorder %s1126_s13, %s1122_s17 }
 0x36b   : > { %p1124_p2 = pnand %p1123_p0, %p1476_p12 }
 0x36c   : > { %p1129_p6 = por %p1128_p3, %p1127_p1 }
 0x36d   : > { %p1125_p9 = pneg %p1124_p2 }
 0x36f   : > { %p1130_p11 = pnand %p1129_p6, %p1125_p9 }
 0x371   : > { %1133 = shalt.err (!%p1130_p11)
}
 0x372   : > { %1022 = dma.vmem_to_hbm [thread:$0]  (%p1476_p12), %s881_s16, 128, %s878_s20, %s867_s11  }
 0x373 PF: > { %s892_s7 = sand.u32 1, %s1160_s21   ;;  %p1477_p13 = scmp.ne.s32.totalorder %s1473_s10, 0 }
 0x374   : > { %p1478_p4 = scmp.ge.s32.totalorder %s1172_s24, 2  ;;  %s893_s18 = scalar_lea.sflag [#allocation4], %s892_s7 }
 0x376   : > { %p1029_p5 = pnand %p1478_p4, %p1477_p13 }
 0x378   : > { %p1030_p7 = pneg %p1029_p5 }
 0x37a   : > { %1155 = dma.done.wait (%p1030_p7), %s893_s18, 128  }
 0x37b   : > { %1157 = vsyncadd (%p1030_p7), %s893_s18, 4294967168  ;;  %p19_p8 = scmp.ge.s32.totalorder %s1248_s27, 4   ;;  %s1479_s21 = smov %s1164_s22 }
 0x37c   : > { %s1480_s22 = smov %s1168_s23  ;;  %s1481_s23 = smov %s1260_s30 }
 0x37d   : > { %s1482_s24 = smov %s1248_s27  ;;  %21 = sbr.rel (!%p19_p8) target bundleno = 5 (0x5), region = 89 }
 0x382   :  { %898 = vsyncpa [#allocation3], 1 }
 0x383   :  { %900 = vsyncpa [#allocation3 + $0x1], 1 }
 0x384   :  { %901 = vsyncpa [#allocation4], 1 }
 0x385   :  { %903 = vsyncpa [#allocation4 + $0x1], 1 }

</bundles_post_ra>
